<compile_context>
chip_gen: v7x
topology: tpu7x:2x2x1
jax: 0.10.0
libtpu: 0.0.40
codegen_flags: <defaults>
</compile_context>

<pallas_src>
import functools

import jax
import jax.numpy as jnp
from jax import lax
from jax.experimental import pallas as pl
from jax.experimental.pallas import tpu as pltpu


def _round_up(x, n):
    return ((x + n - 1) // n) * n


def ems_loss_kernel(x_ref, t_ref, part_ref, *, m, batch, tile_b, num_classes):
    pid = pl.program_id(0)

    x = x_ref[...].astype(jnp.float32)                 # (TB, C) f32
    t = t_ref[...]                                     # (TB, 1) int32

    # one-hot of the target class from a (1, C) iota (no (TB, C) iota temp)
    class_idx = lax.broadcasted_iota(jnp.int32, (1, num_classes), 1)
    onehot = class_idx == t                            # (TB, C) bool

    # fused EMS scaling: multiply only the target logit by m
    x_m = jnp.where(onehot, x * jnp.float32(m), x)

    # numerically stable cross entropy: logsumexp(row) - row[target]
    row_max = jnp.max(x_m, axis=-1, keepdims=True)     # (TB, 1)
    lse = row_max + jnp.log(
        jnp.sum(jnp.exp(x_m - row_max), axis=-1, keepdims=True))
    tgt_logit = jnp.sum(jnp.where(onehot, x_m, jnp.float32(0.0)),
                        axis=-1, keepdims=True)
    per_row = lse - tgt_logit                          # (TB, 1)

    # kill ragged-last-tile garbage rows BEFORE the partial sum (no batch pad);
    # jnp.where also discards any NaN/Inf coming from uninitialized rows.
    row_idx = pid * tile_b + lax.broadcasted_iota(jnp.int32, (tile_b, 1), 0)
    per_row = jnp.where(row_idx < batch, per_row, jnp.float32(0.0))

    # lane-dense per-tile partial-sum write; final mean happens in the wrapper
    partial = jnp.sum(per_row).reshape(1, 1, 1)
    part_ref[...] = jnp.broadcast_to(partial, part_ref.shape)


def ems_loss(inputs, targets, m=4, tile_b=None):
    """inputs: (B, C) float logits, targets: (B,) int class indices -> scalar loss."""
    B, C = inputs.shape
    itemsize = jnp.dtype(inputs.dtype).itemsize

    # ---- batch tile selection -------------------------------------------------
    max_tile = _round_up(B, 8)
    if tile_b is None:
        per_buf_budget = 2 << 20                       # ~2 MiB of logits / buffer
        tb_cap = max(8, (per_buf_budget // max(1, C * itemsize)) // 8 * 8)
        # keep >= 2 grid tiles so both TensorCores get work on v7x megacore
        two_tile_cap = max(8, _round_up(-(-B // 2), 8))
        tile_b = min(tb_cap, two_tile_cap)
    tile_b = max(8, min(_round_up(tile_b, 8), max_tile))

    num_tiles = pl.cdiv(B, tile_b)

    # ---- explicit VMEM budget ---------------------------------------------------
    # double-buffered logits tile + in-kernel f32 temporaries + targets + output.
    # TODO(synk): tile the class dim (2-D grid, online logsumexp accumulator) for
    # very large C where even tile_b=8 would not fit this budget.
    vmem_needed = (2 * tile_b * C * itemsize           # double-buffered input tile
                   + 4 * tile_b * C * 4                # in-kernel f32 temporaries
                   + 2 * tile_b * 4                    # targets tile
                   + 2 * 8 * 128 * 4                   # output block
                   + (1 << 20))                        # slack
    vmem_limit = int(min(max(vmem_needed, 32 << 20), 48 << 20))

    t2d = targets.astype(jnp.int32).reshape(B, 1)
    kernel = functools.partial(ems_loss_kernel, m=m, batch=B,
                               tile_b=tile_b, num_classes=C)

    cost = pl.CostEstimate(
        flops=int(6 * B * C),
        transcendentals=int(B * C + B),
        bytes_accessed=int(B * C * itemsize + B * 4 + num_tiles * 8 * 128 * 4))

    partials = pl.pallas_call(
        kernel,
        out_shape=jax.ShapeDtypeStruct((num_tiles, 8, 128), jnp.float32),
        grid=(num_tiles,),
        in_specs=[
            pl.BlockSpec((tile_b, C), lambda i: (i, 0)),   # full class extent
            pl.BlockSpec((tile_b, 1), lambda i: (i, 0)),
        ],
        out_specs=pl.BlockSpec((1, 8, 128), lambda i: (i, 0, 0)),
        compiler_params=pltpu.CompilerParams(
            dimension_semantics=("parallel",),
            vmem_limit_bytes=vmem_limit),
        cost_estimate=cost,
    )(inputs, t2d)

    # per-tile partial sums -> mean over the true batch size
    return jnp.sum(partials[:, 0, 0]) / jnp.float32(B)


def _ems_loss_ref(inputs, targets, m=4):
    """Pure-JAX reference for sanity checking."""
    B, C = inputs.shape
    onehot = jax.nn.one_hot(targets, C, dtype=jnp.float32)
    x = inputs.astype(jnp.float32)
    x_m = jnp.where(onehot > 0, x * jnp.float32(m), x)
    lse = jax.scipy.special.logsumexp(x_m, axis=-1)
    tgt = jnp.sum(x_m * onehot, axis=-1)
    return jnp.mean(lse - tgt)


if __name__ == "__main__":
    # small shapes consistent with the module: batch=8, num_classes=32
    k_x, k_t = jax.random.split(jax.random.PRNGKey(0))
    B, C = 8, 32
    inputs = jax.random.normal(k_x, (B, C), dtype=jnp.float32)
    targets = jax.random.randint(k_t, (B,), 0, C, dtype=jnp.int32)

    loss = jax.block_until_ready(ems_loss(inputs, targets, m=4))
    ref = jax.block_until_ready(_ems_loss_ref(inputs, targets, m=4))
    assert jnp.allclose(loss, ref, rtol=1e-5, atol=1e-5), (loss, ref)

    # second check: non-128-multiple class dim (C=100, handled by full-extent
    # block, no pad), ragged last batch tile (B=200, auto tile_b=104 -> 2
    # "parallel" grid tiles), no wrapper-side copies at all.
    k_x2, k_t2 = jax.random.split(jax.random.PRNGKey(1))
    B2, C2 = 200, 100
    inputs2 = jax.random.normal(k_x2, (B2, C2), dtype=jnp.float32)
    targets2 = jax.random.randint(k_t2, (B2,), 0, C2, dtype=jnp.int32)

    loss2 = jax.block_until_ready(ems_loss(inputs2, targets2, m=4))
    ref2 = jax.block_until_ready(_ems_loss_ref(inputs2, targets2, m=4))
    assert jnp.allclose(loss2, ref2, rtol=1e-5, atol=1e-5), (loss2, ref2)

    print("KERNEL_OK")
</pallas_src>

<mosaic_0001>
module attributes {stable_mosaic.version = 11 : i64} {
  func.func @ems_loss_kernel(%arg0: i32, %arg1: memref<8x32xf32, #tpu.memory_space<vmem>>, %arg2: memref<8x1xi32, #tpu.memory_space<vmem>>, %arg3: memref<1x8x128xf32, #tpu.memory_space<vmem>>) attributes {dimension_semantics = [#tpu.dimension_semantics<parallel>], iteration_bounds = array<i64: 1>, scalar_prefetch = 0 : i64, scratch_operands = 0 : i64, tpu.core_type = #tpu.core_type<tc>, window_params = [{transform_indices = @transform_0, window_bounds = array<i64: 8, 32>}, {transform_indices = @transform_1, window_bounds = array<i64: 8, 1>}, {transform_indices = @transform_2, window_bounds = array<i64: 1, 8, 128>}]} {
    %c0 = arith.constant 0 : index
    %c0_0 = arith.constant 0 : index
    %0 = vector.load %arg1[%c0, %c0_0] : memref<8x32xf32, #tpu.memory_space<vmem>>, vector<8x32xf32>
    %c0_1 = arith.constant 0 : index
    %c0_2 = arith.constant 0 : index
    %1 = vector.load %arg2[%c0_1, %c0_2] : memref<8x1xi32, #tpu.memory_space<vmem>>, vector<8x1xi32>
    %2 = tpu.iota {dimensions = array<i32: 1>} : vector<1x32xi32>
    %3 = vector.broadcast %2 : vector<1x32xi32> to vector<8x32xi32>
    %4 = vector.broadcast %1 : vector<8x1xi32> to vector<8x32xi32>
    %5 = arith.cmpi eq, %3, %4 : vector<8x32xi32>
    %cst = arith.constant 4.000000e+00 : f32
    %6 = vector.broadcast %cst : f32 to vector<8x32xf32>
    %7 = arith.mulf %0, %6 : vector<8x32xf32>
    %8 = arith.select %5, %7, %0 : vector<8x32xi1>, vector<8x32xf32>
    %cst_3 = arith.constant dense<0xFF800000> : vector<8xf32>
    %9 = vector.multi_reduction <maximumf>, %8, %cst_3 [1] : vector<8x32xf32> to vector<8xf32>
    %10 = vector.shape_cast %9 : vector<8xf32> to vector<8x1xf32>
    %11 = vector.broadcast %10 : vector<8x1xf32> to vector<8x32xf32>
    %12 = arith.subf %8, %11 : vector<8x32xf32>
    %13 = math.exp %12 : vector<8x32xf32>
    %cst_4 = arith.constant dense<0.000000e+00> : vector<8xf32>
    %14 = vector.multi_reduction <add>, %13, %cst_4 [1] : vector<8x32xf32> to vector<8xf32>
    %15 = vector.shape_cast %14 : vector<8xf32> to vector<8x1xf32>
    %16 = math.log %15 : vector<8x1xf32>
    %17 = arith.addf %10, %16 : vector<8x1xf32>
    %cst_5 = arith.constant 0.000000e+00 : f32
    %18 = vector.broadcast %cst_5 : f32 to vector<8x32xf32>
    %19 = arith.select %5, %8, %18 : vector<8x32xi1>, vector<8x32xf32>
    %cst_6 = arith.constant dense<0.000000e+00> : vector<8xf32>
    %20 = vector.multi_reduction <add>, %19, %cst_6 [1] : vector<8x32xf32> to vector<8xf32>
    %21 = vector.shape_cast %20 : vector<8xf32> to vector<8x1xf32>
    %22 = arith.subf %17, %21 : vector<8x1xf32>
    %c8_i32 = arith.constant 8 : i32
    %23 = arith.muli %arg0, %c8_i32 : i32
    %24 = tpu.iota {dimensions = array<i32: 0>} : vector<8x1xi32>
    %25 = vector.broadcast %23 : i32 to vector<8x1xi32>
    %26 = arith.addi %25, %24 : vector<8x1xi32>
    %c8_i32_7 = arith.constant 8 : i32
    %27 = vector.broadcast %c8_i32_7 : i32 to vector<8x1xi32>
    %28 = arith.cmpi slt, %26, %27 : vector<8x1xi32>
    %cst_8 = arith.constant 0.000000e+00 : f32
    %29 = vector.broadcast %cst_8 : f32 to vector<8x1xf32>
    %30 = arith.select %28, %22, %29 : vector<8x1xi1>, vector<8x1xf32>
    %31 = vector.shape_cast %30 : vector<8x1xf32> to vector<1x8x1xf32>
    %cst_9 = arith.constant dense<0.000000e+00> : vector<1xf32>
    %32 = vector.multi_reduction <add>, %31, %cst_9 [1, 2] : vector<1x8x1xf32> to vector<1xf32>
    %33 = vector.shape_cast %32 : vector<1xf32> to vector<1x1x1xf32>
    %34 = vector.extract %33[0, 0, 0] : f32 from vector<1x1x1xf32>
    %35 = vector.broadcast %34 : f32 to vector<1x1x1xf32>
    %36 = vector.shape_cast %35 : vector<1x1x1xf32> to vector<1x1x1xf32>
    %37 = vector.broadcast %36 : vector<1x1x1xf32> to vector<1x8x128xf32>
    %c0_10 = arith.constant 0 : index
    %c0_11 = arith.constant 0 : index
    %c0_12 = arith.constant 0 : index
    %38 = vector.load %arg3[%c0_10, %c0_11, %c0_12] : memref<1x8x128xf32, #tpu.memory_space<vmem>>, vector<1x8x128xf32>
    tpu.vector_store %arg3[%c0_10, %c0_11, %c0_12], %37 {strides = array<i32>} : memref<1x8x128xf32, #tpu.memory_space<vmem>>, vector<1x8x128xf32>,
    return
  }
  func.func @transform_0(%arg0: i32) -> (i32, i32) {
    %c0_i32 = arith.constant 0 : i32
    %c0_i32_0 = arith.constant 0 : i32
    return %arg0, %c0_i32 : i32, i32
  }
  func.func @transform_1(%arg0: i32) -> (i32, i32) {
    %c0_i32 = arith.constant 0 : i32
    %c0_i32_0 = arith.constant 0 : i32
    return %arg0, %c0_i32 : i32, i32
  }
  func.func @transform_2(%arg0: i32) -> (i32, i32, i32) {
    %c0_i32 = arith.constant 0 : i32
    %c0_i32_0 = arith.constant 0 : i32
    %c0_i32_1 = arith.constant 0 : i32
    return %arg0, %c0_i32, %c0_i32_0 : i32, i32, i32
  }
}

</mosaic_0001>

<bundles_post_ra>
// kernel: tpu_custom_call.1
= control target key start
LH: loop header
LB: loop body
LE: loop exit
PB: predicated region body
PF: predicated region fallthrough
CT: control target
= control target key end

     0   :  { %s142_s0 = inlined_call_operand.vmem [shape: f32[8,32], index: 0, kind: input, shape index: {}]   ;;  %s143_s1 = inlined_call_operand.vmem [shape: s32[8,1], index: 1, kind: input, shape index: {}]   ;;  %s144_s2 = inlined_call_operand.hbm [shape: f32[1,8,128], index: 2, kind: output, shape index: {}]  }
   0x1   :  { %v13_v0 = vld [vmem:[%s143_s1] sm:$0xff] }
   0x2   :  { %7 = vsyncpa [#allocation3], 0  ;;  %v107_v1 = vmov 0   ;;  %v14_v2 = vlaneseq  ;;  %v12_v3 = vld [vmem:[%s142_s0] sm:$0xff]  ;;  %vm22_vm0 = vcmask 261120   ;;  %vm47_vm2 = vcmask 7168  }
   0x3   :  { %78 = vset.pattern.permute.xlu0 %v107_v1  ;;  %v20_v5 = vmul.f32 4.0, %v12_v3  ;;  %s108_s0 = smov [#allocation2]  }
   0x4   :  { %17 = vperm.xlu0 %78, %v13_v0   ;;  %v15_v4 = vand.u32 127, %v14_v2  ;;  %s66_s1 = sshll.u32 %s108_s0, 4  ;;  %s67_s1 = int_to_ptr.vmem [resolvable:$true] %s66_s1 }
   0x5   :  { %s83_s14 = scalar_lea.vmem %s67_s1, 128  ;;  %p88_p1 = scmp.lt.s32.totalorder %s67_s1, %s67_s1 }
   0x6   :  { %p84_p0 = scmp.ne.s32.totalorder %s67_s1, %s83_s14  ;;  %p89_p2 = scmp.lt.s32.totalorder %s83_s14, %s83_s14 }
   0x8   :  { %p90_p3 = por %p89_p2, %p88_p1 }
   0xa   :  { %p91_p4 = pnand %p90_p3, %p84_p0 }
  0x83   :  { %v18_v6 = vpop.permute.xlu0 %17 }
  0x84   :  { %vm19_vm1 = vcmp.eq.s32.totalorder %v15_v4, %v18_v6 }
  0x85   :  { %v21_v7 = vsel %vm19_vm1, %v20_v5, %v12_v3  ;;  %v35_v8 = vsel %vm19_vm1, %v20_v5, 0.0 }
  0x86   :  { %v23_v9 = vsel %vm22_vm0, %v21_v7, -inf  ;;  %v36_v15 = vsel %vm22_vm0, %v35_v8, 0.0 }
  0x87   :  { %24 = vmax.xlane.f32.xlu0 %v23_v9 }
 0x114   :  { %v25_v10 = vpop.xlane.xlu0 %24 }
 0x115   :  { %v26_v11 = vsub.f32 %v21_v7, %v25_v10 }
 0x117   :  { %v27_v12 = vmul.f32 1.442695, %v26_v11 }
 0x119   :  { %79 = vpow2.f32 %v27_v12 }
 0x123   :  { %v80_v13 = vpop.eup %79 }
 0x124   :  { %v29_v14 = vsel %vm22_vm0, %v80_v13, 0.0 }
 0x125   :  { %30 = vadd.xlane.f32.xlu1 %v29_v14 }
 0x129   :  { %37 = vadd.xlane.f32.xlu1 %v36_v15 }
 0x1b2   :  { %v31_v16 = vpop.xlane.xlu1 %30 }
 0x1b3   :  { %81 = vlog2.f32 %v31_v16 }
 0x1b6   :  { %v38_v20 = vpop.xlane.xlu1 %37 }
 0x1bd   :  { %v82_v17 = vpop.eup %81 }
 0x1be   :  { %v33_v18 = vmul.f32 0.6931472, %v82_v17 }
 0x1c0   :  { %v34_v19 = vadd.f32 %v33_v18, %v25_v10 }
 0x1c2   :  { %v39_v21 = vsub.f32 %v34_v19, %v38_v20 }
 0x1c4   :  { %v48_v22 = vsel %vm47_vm2, %v39_v21, 0.0 }
 0x1c5   :  { %49 = vadd.xlane.f32.xlu1 %v48_v22 }
 0x252   :  { %v50_v23 = vpop.xlane.xlu1 %49 }
 0x253   :  { %v51_v24 = vrot.slane %v50_v23, 4 }
 0x255   :  { %v52_v25 = vadd.f32 %v51_v24, %v50_v23 }
 0x257   :  { %v53_v26 = vrot.slane %v52_v25, 2 }
 0x259   :  { %v54_v27 = vadd.f32 %v53_v26, %v52_v25 }
 0x25b   :  { %v55_v28 = vrot.slane %v54_v27, 1 }
 0x25d   :  { %v56_v29 = vadd.f32 %v55_v28, %v54_v27 }
 0x25f   :  { %74 = vpush %v56_v29 }
 0x290   :  { %s75_s13 = spop %74 }
 0x291   :  { %v58_v30 = vstv %s75_s13 }
 0x292   :  { %59 = vst [vmem:[#allocation2] sm:$0xff] %v58_v30 }
 0x293   :  { %94 = shalt.err (!%p91_p4)
}
 0x294   :  { %s95_s17 = scalar_lea.hbm %s144_s2, 128 }
 0x295   :  { %p96_p5 = scmp.ne.s32.totalorder %s144_s2, %s95_s17  ;;  %p99_p6 = scmp.lt.u32.totalorder %s95_s17, %s144_s2 }
 0x297   :  { %p101_p7 = pnand %p99_p6, %p96_p5 }
 0x299   :  { %104 = shalt.err (!%p101_p7)
}
 0x29a   :  { %69 = dma.vmem_to_hbm [thread:$0]  %s67_s1, 128, %s144_s2, [#allocation3]  }
 0x29b   :  { %105 = dma.done.wait [#allocation3], 128  }
 0x29c   :  { %106 = vsyncadd [#allocation3], 4294967168 }
 0x29d   :  { %73 = vsyncpa [#allocation3], 1 }

</bundles_post_ra>
